<compile_context>
chip_gen: v6e
topology: v6e:2x2x1
jax: 0.10.0
libtpu: 0.0.40
codegen_flags: <defaults>
</compile_context>

<pallas_src>
import functools

import jax
import jax.numpy as jnp
from jax.experimental import pallas as pl
from jax.experimental.pallas import tpu as pltpu


def _catfactor_kernel(*refs, num_factor, num_category, nonclass):
    if nonclass:
        x_ref, b_ref, o_ref = refs
    else:
        x_ref, o_ref = refs
        b_ref = None
    F, C = num_factor, num_category
    bn = x_ref.shape[0]

    # Lane-dense load of the whole (bn, F*C) block, then an in-register view as
    # (bn, F, C) for the per-group softmax (same split-minor-dim reshape pattern
    # used by standard Pallas TPU kernels, e.g. for sub-word unpacking).
    x = x_ref[...].astype(jnp.float32)                    # (bn, F*C)
    x3 = x.reshape(bn, F, C)                              # (bn, F, C)

    m = jnp.max(x3, axis=-1, keepdims=True)               # (bn, F, 1)
    if nonclass:
        # Bias kept as (F, 1): F on sublanes matches the (bn, F, 1) compute
        # layout directly (no relayout); it is tiny and loaded once.
        b = b_ref[...].astype(jnp.float32)[None, :, :]    # (1, F, 1)
        m = jnp.maximum(m, b)
        e = jnp.exp(x3 - m)                               # (bn, F, C)
        denom = jnp.sum(e, axis=-1, keepdims=True) + jnp.exp(b - m)
    else:
        e = jnp.exp(x3 - m)
        denom = jnp.sum(e, axis=-1, keepdims=True)

    # One reciprocal per (bn, F, 1) row instead of a full-width divide.
    inv = pl.reciprocal(denom, approx=False)
    probs = e * inv                                       # (bn, F, C)

    # Merge back to the lane-dense layout -> single unmasked store.
    o_ref[...] = probs.reshape(bn, F * C).astype(o_ref.dtype)


def _round_up(v, m):
    return ((v + m - 1) // m) * m


def _default_block_n(n_rows, row_width):
    # Target ~1 MiB of f32 per tile: with double-buffered input + output plus
    # the f32 intermediates the per-step working set stays well under v7x's
    # 32 MiB scoped VMEM (and far under v5e/v6e), while large N still yields
    # many grid steps for DMA/compute overlap and cross-TC sharding.
    target_elems = (1 * 1024 * 1024) // 4
    bn = max(8, target_elems // max(row_width, 1))
    bn = min(bn, 2048)
    return max(8, (bn // 8) * 8)


def cat_factor_forward(x, num_factor, num_category, *, nonclass=False,
                       nonclass_logprob=None, block_n=None):
    """x: [N, num_factor * num_category] -> [N, num_factor * num_category]."""
    assert x.ndim == 2
    N, D = x.shape
    F, C = num_factor, num_category
    assert D == F * C

    # Row tiling: multiple of 8 (sublanes); pad N so any batch size works.
    bn = _default_block_n(N, D) if block_n is None else int(block_n)
    bn = min(bn, _round_up(N, 8))
    bn = max(8, (bn // 8) * 8)
    n_pad = _round_up(N, bn)
    x_in = x if n_pad == N else jnp.pad(x, ((0, n_pad - N), (0, 0)))
    grid = (n_pad // bn,)

    in_specs = [pl.BlockSpec((bn, D), lambda i: (i, 0))]
    args = [x_in]
    if nonclass:
        # Only pass the bias operand when it is actually used.
        if nonclass_logprob is None:
            # Deterministic parameter init, matching torch.Tensor(1, F, 1).fill_(5)
            nonclass_logprob = jnp.full((F, 1), 5.0, dtype=jnp.float32)
        else:
            nonclass_logprob = jnp.reshape(nonclass_logprob, (F, 1)).astype(jnp.float32)
        # Constant index map -> the tiny (F, 1) block stays resident across steps.
        in_specs.append(pl.BlockSpec((F, 1), lambda i: (0, 0)))
        args.append(nonclass_logprob)

    kernel = functools.partial(_catfactor_kernel, num_factor=F,
                               num_category=C, nonclass=nonclass)

    out = pl.pallas_call(
        kernel,
        out_shape=jax.ShapeDtypeStruct((n_pad, D), x.dtype),
        grid=grid,
        in_specs=in_specs,
        out_specs=pl.BlockSpec((bn, D), lambda i: (i, 0)),
        compiler_params=pltpu.CompilerParams(
            dimension_semantics=("parallel",),
            vmem_limit_bytes=32 * 1024 * 1024,
        ),
    )(*args)

    return out[:N] if n_pad != N else out


def _reference(x, F, C, nonclass, logprob):
    N = x.shape[0]
    r = x.reshape(N, F, C)
    if nonclass:
        b = jnp.broadcast_to(jnp.reshape(logprob, (1, F, 1)), (N, F, 1))
        r = jnp.concatenate([r, b], axis=2)
        s = jax.nn.softmax(r, axis=-1)[:, :, :-1]
    else:
        s = jax.nn.softmax(r, axis=-1)
    return s.reshape(N, F * C)


if __name__ == "__main__":
    key = jax.random.PRNGKey(0)
    N, F, C = 64, 8, 16                      # D = F*C = 128 -> lane-dense blocks
    x = jax.random.normal(key, (N, F * C), dtype=jnp.float32)

    # nonclass=False, multi-step grid (exercises pipelining + parallel sharding)
    y0 = cat_factor_forward(x, F, C, nonclass=False, block_n=16)
    y0 = jax.block_until_ready(y0)
    ref0 = _reference(x, F, C, False, None)

    # nonclass=True (nonclass_logprob filled with 5.0, as in __init__), default tiling
    logprob = jnp.full((F, 1), 5.0, dtype=jnp.float32)
    y1 = cat_factor_forward(x, F, C, nonclass=True, nonclass_logprob=logprob)
    y1 = jax.block_until_ready(y1)
    ref1 = _reference(x, F, C, True, logprob)

    # Ragged batch (N not a multiple of block_n) -> pad/slice path
    x2 = x[:50]
    y2 = cat_factor_forward(x2, F, C, nonclass=True, nonclass_logprob=logprob,
                            block_n=16)
    y2 = jax.block_until_ready(y2)
    ref2 = _reference(x2, F, C, True, logprob)

    assert y0.shape == x.shape and y1.shape == x.shape and y2.shape == x2.shape
    assert jnp.allclose(y0, ref0, atol=1e-5, rtol=1e-5)
    assert jnp.allclose(y1, ref1, atol=1e-5, rtol=1e-5)
    assert jnp.allclose(y2, ref2, atol=1e-5, rtol=1e-5)

    print("KERNEL_OK")
</pallas_src>

<mosaic_0001>
module attributes {stable_mosaic.version = 11 : i64} {
  func.func @_catfactor_kernel(%arg0: i32, %arg1: memref<16x128xf32, #tpu.memory_space<vmem>>, %arg2: memref<16x128xf32, #tpu.memory_space<vmem>>) attributes {dimension_semantics = [#tpu.dimension_semantics<parallel>], iteration_bounds = array<i64: 4>, scalar_prefetch = 0 : i64, scratch_operands = 0 : i64, tpu.core_type = #tpu.core_type<tc>, window_params = [{transform_indices = @transform_0, window_bounds = array<i64: 16, 128>}, {transform_indices = @transform_1, window_bounds = array<i64: 16, 128>}]} {
    %c0 = arith.constant 0 : index
    %c0_0 = arith.constant 0 : index
    %0 = vector.load %arg1[%c0, %c0_0] : memref<16x128xf32, #tpu.memory_space<vmem>>, vector<16x128xf32>
    %1 = vector.shape_cast %0 : vector<16x128xf32> to vector<16x8x16xf32>
    %cst = arith.constant dense<0xFF800000> : vector<16x8xf32>
    %2 = vector.multi_reduction <maximumf>, %1, %cst [2] : vector<16x8x16xf32> to vector<16x8xf32>
    %3 = vector.shape_cast %2 : vector<16x8xf32> to vector<16x8x1xf32>
    %4 = vector.broadcast %3 : vector<16x8x1xf32> to vector<16x8x16xf32>
    %5 = arith.subf %1, %4 : vector<16x8x16xf32>
    %6 = math.exp %5 : vector<16x8x16xf32>
    %cst_1 = arith.constant dense<0.000000e+00> : vector<16x8xf32>
    %7 = vector.multi_reduction <add>, %6, %cst_1 [2] : vector<16x8x16xf32> to vector<16x8xf32>
    %8 = vector.shape_cast %7 : vector<16x8xf32> to vector<16x8x1xf32>
    %9 = tpu.reciprocal %8 : vector<16x8x1xf32> -> vector<16x8x1xf32>
    %10 = vector.broadcast %9 : vector<16x8x1xf32> to vector<16x8x16xf32>
    %11 = arith.mulf %6, %10 : vector<16x8x16xf32>
    %12 = vector.shape_cast %11 : vector<16x8x16xf32> to vector<16x128xf32>
    %c0_2 = arith.constant 0 : index
    %c0_3 = arith.constant 0 : index
    %13 = vector.load %arg2[%c0_2, %c0_3] : memref<16x128xf32, #tpu.memory_space<vmem>>, vector<16x128xf32>
    tpu.vector_store %arg2[%c0_2, %c0_3], %12 {strides = array<i32>} : memref<16x128xf32, #tpu.memory_space<vmem>>, vector<16x128xf32>,
    return
  }
  func.func @transform_0(%arg0: i32) -> (i32, i32) {
    %c0_i32 = arith.constant 0 : i32
    %c0_i32_0 = arith.constant 0 : i32
    return %arg0, %c0_i32 : i32, i32
  }
  func.func @transform_1(%arg0: i32) -> (i32, i32) {
    %c0_i32 = arith.constant 0 : i32
    %c0_i32_0 = arith.constant 0 : i32
    return %arg0, %c0_i32 : i32, i32
  }
}

</mosaic_0001>

<bundles_post_ra>
// kernel: tpu_custom_call.1
= control target key start
LH: loop header
LB: loop body
LE: loop exit
PB: predicated region body
PF: predicated region fallthrough
CT: control target
= control target key end

     0   :  { %6 = vsyncpa [#allocation3], 0  ;;  %s1807_s0 = inlined_call_operand.hbm [shape: f32[64,128], index: 0, kind: input, shape index: {}]   ;;  %s1808_s1 = inlined_call_operand.hbm [shape: f32[64,128], index: 1, kind: output, shape index: {}]  }
   0x1   :  { %8 = vsyncpa [#allocation3 + $0x1], 0 }
   0x2   :  { %9 = vsyncpa [#allocation4], 0 }
   0x3   :  { %11 = vsyncpa [#allocation4 + $0x1], 0  ;;  %s1327_s6 = smov 0   ;;  %s1329_s7 = smov 0  }
   0x4   :  { %s1331_s8 = smov 0   ;;  %s1333_s9 = smov 0  }
   0x5 LB: > { %s1348_s10 = sadd.s32 4294967295, %s1300_s9   ;;  %s1069_s11 = sadd.s32 4294967294, %s1300_s9   ;;  %s1300_s9 = sphi %s1333_s9, %s1822_s9   ;;  %s1296_s8 = sphi %s1331_s8, %s1821_s8   ;;  %s1292_s7 = sphi %s1329_s7, %s1820_s7   ;;  %s1288_s6 = sphi %s1327_s6, %s1819_s6  }
   0x6   : > { %s1352_s12 = sadd.s32 1, %s1300_s9   ;;  %s24_s13 = sadd.s32 1, %s1296_s8 }
   0x7   : > { %s21_s14 = ssub.s32 %s1300_s9, %s1352_s12  ;;  %p31_p0 = scmp.ne.s32.totalorder %s1296_s8, %s1292_s7 }
   0x8   : > { %p22_p1 = scmp.eq.s32.totalorder %s21_s14, 0  ;;  %p32_p2 = scmp.eq.s32.totalorder %s1300_s9, 0 }
   0x9   : > { %p37_p3 = scmp.ne.s32.totalorder %s1292_s7, %s1288_s6  ;;  %p38_p4 = scmp.eq.s32.totalorder %s1348_s10, 0 }
   0xa   : > { %s1364_s15 = scalar_select %p22_p1, %s1296_s8, %s24_s13  }
   0xb   : > { %p1366_p5 = por %p32_p2, %p31_p0  ;;  %p1370_p6 = por %p38_p4, %p37_p3 }
   0xc   : > { %p61_p7 = scmp.eq.s32.totalorder %s1348_s10, 3  ;;  %p67_p8 = scmp.eq.s32.totalorder %s1069_s11, 3 }
   0xd   : > { %s1812_s17 = scalar_select %p1370_p6, 1, 0 }
   0xe   : > { %p1097_p9 = scmp.lt.s32.totalorder %s1300_s9, 4  ;;  %p1376_p10 = por %p61_p7, %p31_p0 }
   0xf   : > { %p1380_p11 = por %p67_p8, %p37_p3  ;;  %s87_s20 = sand.u32 1, %s1296_s8  }
  0x10   : > { %s1813_s18 = scalar_select %p1376_p10, 1, 0 }
  0x11   : > { %s1814_s19 = scalar_select %p1380_p11, 1, 0 }
  0x12   : > { %s1083_s21 = sshll.u32 %s1300_s9, 8  ;;  %s1072_s22 = sshll.u32 %s87_s20, 4 }
  0x13   : > { %s1389_s25 = scalar_lea.hbm %s1807_s0, %s1083_s21  ;;  %s91_s26 = scalar_lea.vmem [#allocation2], %s1072_s22 }
  0x14   : > { %s98_s27 = sshll.u32 %s91_s26, 4  ;;  %p1393_p12 = pnand %p1097_p9, %p1366_p5  ;;  %s1397_s27 = int_to_ptr.vmem [resolvable:$true] %s98_s27 }
  0x15   : > { %s1399_s29 = scalar_lea.sflag [#allocation3], %s87_s20  ;;  %s1208_s30 = scalar_lea.hbm %s1389_s25, 256 }
  0x16   : > { %p1209_p13 = scmp.ne.s32.totalorder %s1389_s25, %s1208_s30  ;;  %p1210_p0 = pneg %p1393_p12 }
  0x17   : > { %s1213_s4 = scalar_lea.hbm %s1807_s0, 1024  ;;  %p1214_p3 = scmp.lt.s32.totalorder %s1389_s25, %s1807_s0 }
  0x18   : > { %p1211_p1 = pnand %p1210_p0, %p1209_p13  ;;  %p1215_p4 = scmp.lt.s32.totalorder %s1213_s4, %s1208_s30 }
  0x1a   : > { %p1212_p2 = pneg %p1211_p1  ;;  %p1216_p5 = por %p1215_p4, %p1214_p3 }
  0x1c   : > { %p1217_p7 = pnand %p1216_p5, %p1212_p2 }
  0x1e   : > { %1220 = shalt.err (!%p1217_p7)
}
  0x1f   : > { %s1221_s13 = scalar_lea.vmem %s1397_s27, 256  ;;  %s1302_s14 = smov [#allocation2]  }
  0x20   : > { %p1222_p8 = scmp.ne.s32.totalorder %s1397_s27, %s1221_s13  ;;  %s1226_s16 = sshll.u32 %s1302_s14, 4  ;;  %s1227_s16 = int_to_ptr.vmem [resolvable:$false] %s1226_s16 }
  0x21   : > { %s1228_s20 = scalar_lea.vmem %s1227_s16, 512  ;;  %p1229_p1 = scmp.lt.s32.totalorder %s1397_s27, %s1227_s16 }
  0x22   : > { %p1224_p9 = pnand %p1222_p8, %p1210_p0  ;;  %p1230_p11 = scmp.lt.s32.totalorder %s1228_s20, %s1221_s13 }
  0x24   : > { %p1225_p13 = pneg %p1224_p9  ;;  %p1231_p10 = por %p1230_p11, %p1229_p1 }
  0x26   : > { %p1232_p6 = pnand %p1231_p10, %p1225_p13 }
  0x28   : > { %1235 = shalt.err (!%p1232_p6)
}
  0x29   : > { %s1303_s21 = smov 128   ;;  %s1304_s22 = smov 8  }
  0x2a   : > { %1092 = dma.hbm_to_vmem [thread:$0]  (!%p1393_p12), %s1389_s25, 256, %s1397_s27, %s1399_s29, %s1303_s21, %s1303_s21, %s1304_s22  }
  0x2b   : > { %p1075_p0 = scmp.ge.s32.totalorder %s1300_s9, 1  ;;  %p106_p2 = scmp.lt.s32.totalorder %s1300_s9, 5 }
  0x2d   : > { %p107_p3 = pnand %p1075_p0, %p106_p2 }
  0x2e   : > { %s1423_s23 = sand.u32 (!%p107_p3), 1, %s1292_s7   ;;  %p1816_p6 = scmp.ne.s32.totalorder (!%p107_p3), %s1812_s17, 0 }
  0x2f   : > { %110 = sbr.rel (%p107_p3) target bundleno = 707 (0x2c3), region = 24  ;;  %s1076_s24 = sshll.u32 (!%p107_p3), %s1423_s23, 4 }
  0x30   : > { %s113_s26 = scalar_lea.sflag (!%p107_p3), [#allocation3], %s1423_s23  ;;  %s116_s30 = scalar_lea.vmem (!%p107_p3), [#allocation2], %s1076_s24 }
  0x34   : > { %1279 = dma.done.wait (%p1816_p6), %s113_s26, 256  }
  0x35   : > { %1281 = vsyncadd (%p1816_p6), %s113_s26, 4294967040  ;;  %v137_v0 = vld [vmem:[%s116_s30] sm:$0xff]  ;;  %s1305_s25 = smov 96   ;;  %s1306_s27 = smov 112   ;;  %v1435_v1 = vld [vmem:[%s116_s30 + $0x8] sm:$0xff]  ;;  %v188_v10 = vlaneseq  ;;  %vm455_vm0 = vcmask 130048  }
  0x36   : > { %147 = vrot.lane.b32.xlu1 %v137_v0, %s1305_s25  ;;  %141 = vrot.lane.b32.xlu0 %v137_v0, %s1306_s27  ;;  %s1307_s28 = smov 80   ;;  %s1308_s17 = smov 64   ;;  %v1312_v8 = vmov 1983009808   ;;  %v1313_v17 = vmov 1934713408  }
  0x37   : > { %s1309_s29 = smov 48   ;;  %s1310_s2 = smov 32   ;;  %v186_v9 = vunpack.c.l.s4 %v1312_v8  ;;  %v189_v14 = vshrl.u32 %v188_v10, 7  ;;  %v250_v18 = vunpack.c.l.s4 %v1313_v17  ;;  %vm962_vm1 = vcmask 261120  }
  0x38   : > { %s1311_s3 = smov 16   ;;  %vm965_vm2 = vcmask 392192   ;;  %vm968_vm3 = vcmask 523264   ;;  %s134_s4 = scalar_lea.vmem [#allocation5], %s1076_s24  ;;  %vm971_vm4 = vcmask 654336   ;;  %vm974_vm5 = vcmask 785408  }
  0x39   : > { %v187_v13 = vunpack.c.0.s8 %v186_v9  ;;  %v251_v26 = vunpack.c.0.s8 %v250_v18  ;;  %s996_s5 = sshll.u32 %s134_s4, 4  ;;  %s1084_s11 = sshll.u32 %s1348_s10, 8  ;;  %vm977_vm6 = vcmask 916480   ;;  %s1760_s5 = int_to_ptr.vmem [resolvable:$true] %s996_s5 }
  0x3a   : > { %149 = vrot.lane.b32.xlu1 %v1435_v1, %s1305_s25  ;;  %143 = vrot.lane.b32.xlu0 %v1435_v1, %s1306_s27  ;;  %s1765_s16 = scalar_lea.hbm %s1808_s1, %s1084_s11  ;;  %s983_s10 = scalar_lea.sflag [#allocation4], %s1423_s23 }
  0x3b   : > { %v1466_v19 = vsub.s32 %v187_v13, %v189_v14  ;;  %v1478_v44 = vsub.s32 %v251_v26, %v189_v14  ;;  %s1236_s20 = scalar_lea.vmem %s1760_s5, 256  ;;  %p1817_p11 = scmp.ne.s32.totalorder %s1813_s18, 0 }
  0x3c   : > { %p1237_p10 = scmp.ne.s32.totalorder %s1760_s5, %s1236_s20  ;;  %s1314_s21 = smov [#allocation5]  }
  0x3d   : > { %s1240_s22 = sshll.u32 %s1314_s21, 4  ;;  %s1241_s22 = int_to_ptr.vmem [resolvable:$false] %s1240_s22 }
  0x3e   : > { %155 = vrot.lane.b32.xlu1 %v1435_v1, %s1307_s28  ;;  %153 = vrot.lane.b32.xlu0 %v137_v0, %s1307_s28  ;;  %p1238_p12 = pnand %p1237_p10, %p1817_p11  ;;  %s1242_s24 = scalar_lea.vmem %s1241_s22, 512 }
  0x3f   : > { %p1243_p5 = scmp.lt.s32.totalorder %s1760_s5, %s1241_s22  ;;  %p1244_p7 = scmp.lt.s32.totalorder %s1242_s24, %s1236_s20 }
  0x40   : > { %p1239_p4 = pneg %p1238_p12 }
  0x41   : > { %p1245_p8 = por %p1244_p7, %p1243_p5 }
  0x42   : > { %161 = vrot.lane.b32.xlu1 %v1435_v1, %s1308_s17  ;;  %159 = vrot.lane.b32.xlu0 %v137_v0, %s1308_s17 }
  0x43   : > { %p1246_p9 = pnand %p1245_p8, %p1239_p4 }
  0x46   : > { %167 = vrot.lane.b32.xlu1 %v1435_v1, %s1309_s29  ;;  %165 = vrot.lane.b32.xlu0 %v137_v0, %s1309_s29 }
  0x4a   : > { %173 = vrot.lane.b32.xlu1 %v1435_v1, %s1310_s2  ;;  %171 = vrot.lane.b32.xlu0 %v137_v0, %s1310_s2 }
  0x4e   : > { %179 = vrot.lane.b32.xlu1 %v1435_v1, %s1311_s3  ;;  %177 = vrot.lane.b32.xlu0 %v137_v0, %s1311_s3 }
  0xa8   : > { %v148_v2 = vpop.permute.xlu1 %147  ;;  %v142_v3 = vpop.permute.xlu0 %141 }
  0xa9   : > { %v183_v20 = vcombine.low %v137_v0, %v148_v2  ;;  %v184_v24 = vcombine.high %v137_v0, %v148_v2 }
  0xab   : > { %v191_v27 = vrot.slane %v183_v20, %v1466_v19  ;;  %v198_v35 = vrot.slane %v184_v24, %v1466_v19 }
  0xac   : > { %v1456_v4 = vpop.permute.xlu1 %149  ;;  %v1458_v5 = vpop.permute.xlu0 %143 }
  0xad   : > { %v319_v45 = vcombine.low %v1435_v1, %v1456_v4 }
  0xaf   : > { %v327_v59 = vrot.slane %v319_v45, %v1466_v19 }
  0xb0   : > { %v1460_v6 = vpop.permute.xlu1 %155  ;;  %v154_v7 = vpop.permute.xlu0 %153 }
  0xb1   : > { %v199_v21 = vcombine.low %v142_v3, %v154_v7  ;;  %v200_v25 = vcombine.high %v142_v3, %v154_v7  ;;  %v335_v46 = vcombine.low %v1458_v5, %v1460_v6 }
  0xb3   : > { %v207_v28 = vrot.slane %v199_v21, %v1466_v19  ;;  %v214_v36 = vrot.slane %v200_v25, %v1466_v19  ;;  %v343_v60 = vrot.slane %v335_v46, %v1466_v19 }
  0xb4   : > { %v1462_v11 = vpop.permute.xlu1 %161  ;;  %v160_v12 = vpop.permute.xlu0 %159 }
  0xb5   : > { %v247_v41 = vcombine.low %v191_v27, %v207_v28  ;;  %v248_v47 = vcombine.high %v191_v27, %v207_v28  ;;  %v263_v48 = vcombine.low %v198_v35, %v214_v36  ;;  %v264_v61 = vcombine.high %v198_v35, %v214_v36 }
  0xb6   : > { %v384_v25 = vcombine.high %v327_v59, %v343_v60 }
  0xb7   : > { %v255_v55 = vrot.slane %v247_v41, %v1478_v44  ;;  %v271_v0 = vrot.slane %v263_v48, %v1478_v44  ;;  %v262_v2 = vrot.slane %v248_v47, %v1478_v44  ;;  %v278_v17 = vrot.slane %v264_v61, %v1478_v44 }
  0xb8   : > { %v1464_v15 = vpop.permute.xlu1 %167  ;;  %v166_v16 = vpop.permute.xlu0 %165 }
  0xbc   : > { %v174_v22 = vpop.permute.xlu1 %173  ;;  %v172_v23 = vpop.permute.xlu0 %171 }
  0xbd   : > { %v215_v29 = vcombine.low %v160_v12, %v172_v23  ;;  %v216_v30 = vcombine.high %v160_v12, %v172_v23  ;;  %v351_v37 = vcombine.low %v1462_v11, %v174_v22  ;;  %v352_v3 = vcombine.high %v1462_v11, %v174_v22 }
  0xbe   : > { %v320_v11 = vcombine.high %v1435_v1, %v1456_v4 }
  0xbf   : > { %v223_v42 = vrot.slane %v215_v29, %v1466_v19  ;;  %v230_v43 = vrot.slane %v216_v30, %v1466_v19  ;;  %v359_v52 = vrot.slane %v351_v37, %v1466_v19  ;;  %v366_v18 = vrot.slane %v352_v3, %v1466_v19 }
  0xc0   : > { %v180_v31 = vpop.permute.xlu1 %179  ;;  %v178_v32 = vpop.permute.xlu0 %177 }
  0xc1   : > { %v231_v33 = vcombine.low %v166_v16, %v178_v32  ;;  %v232_v34 = vcombine.high %v166_v16, %v178_v32  ;;  %v367_v38 = vcombine.low %v1464_v15, %v180_v31  ;;  %v368_v7 = vcombine.high %v1464_v15, %v180_v31 }
  0xc2   : > { %v336_v15 = vcombine.high %v1458_v5, %v1460_v6  ;;  %v383_v16 = vcombine.low %v327_v59, %v343_v60  ;;  %v334_v5 = vrot.slane %v320_v11, %v1466_v19 }
  0xc3   : > { %v239_v39 = vrot.slane %v231_v33, %v1466_v19  ;;  %v246_v40 = vrot.slane %v232_v34, %v1466_v19  ;;  %v375_v53 = vrot.slane %v367_v38, %v1466_v19  ;;  %v382_v20 = vrot.slane %v368_v7, %v1466_v19 }
  0xc4   : > { %v350_v6 = vrot.slane %v336_v15, %v1466_v19  ;;  %v391_v26 = vrot.slane %v383_v16, %v1478_v44  ;;  %v398_v34 = vrot.slane %v384_v25, %v1478_v44 }
  0xc5   : > { %v279_v49 = vcombine.low %v223_v42, %v239_v39  ;;  %v280_v50 = vcombine.high %v223_v42, %v239_v39  ;;  %v295_v51 = vcombine.low %v230_v43, %v246_v40  ;;  %v296_v54 = vcombine.high %v230_v43, %v246_v40 }
  0xc6   : > { %v415_v8 = vcombine.low %v359_v52, %v375_v53  ;;  %v416_v21 = vcombine.high %v359_v52, %v375_v53  ;;  %v431_v27 = vcombine.low %v366_v18, %v382_v20  ;;  %v399_v33 = vcombine.low %v334_v5, %v350_v6 }
  0xc7   : > { %v287_v56 = vrot.slane %v279_v49, %v1478_v44  ;;  %v303_v57 = vrot.slane %v295_v51, %v1478_v44  ;;  %v294_v58 = vrot.slane %v280_v50, %v1478_v44  ;;  %v310_v9 = vrot.slane %v296_v54, %v1478_v44 }
  0xc8   : > { %v423_v22 = vrot.slane %v415_v8, %v1478_v44  ;;  %v430_v28 = vrot.slane %v416_v21, %v1478_v44  ;;  %v432_v35 = vcombine.high %v366_v18, %v382_v20  ;;  %v439_v36 = vrot.slane %v431_v27, %v1478_v44 }
  0xc9   : > { %v1492_v62 = vcombine.high %v255_v55, %v287_v56  ;;  %v1494_v63 = vcombine.low %v255_v55, %v287_v56  ;;  %v1505_v13 = vcombine.low %v271_v0, %v303_v57  ;;  %v1507_v14 = vcombine.low %v262_v2, %v294_v58 }
  0xca   : > { %v1521_v1 = vcombine.low %v278_v17, %v310_v9  ;;  %v1523_v4 = vcombine.high %v262_v2, %v294_v58  ;;  %v1533_v31 = vcombine.low %v391_v26, %v423_v22  ;;  %v1535_v32 = vcombine.high %v271_v0, %v303_v57 }
  0xcb   : > { %v459_v10 = vsel %vm455_vm0, %v1492_v62, -inf  ;;  %v456_v12 = vsel %vm455_vm0, %v1494_v63, -inf  ;;  %v468_v23 = vsel %vm455_vm0, %v1505_v13, -inf  ;;  %v462_v24 = vsel %vm455_vm0, %v1507_v14, -inf }
  0xcc   : > { %460 = vmax.xlane.f32.xlu1 %v459_v10  ;;  %457 = vmax.xlane.f32.xlu0 %v456_v12  ;;  %v474_v29 = vsel %vm455_vm0, %v1521_v1, -inf  ;;  %v465_v30 = vsel %vm455_vm0, %v1523_v4, -inf  ;;  %v480_v37 = vsel %vm455_vm0, %v1533_v31, -inf  ;;  %v471_v38 = vsel %vm455_vm0, %v1535_v32, -inf }
  0xcd   : > { %v1543_v39 = vcombine.low %v398_v34, %v430_v28  ;;  %v1545_v40 = vcombine.high %v278_v17, %v310_v9  ;;  %v400_v41 = vcombine.high %v334_v5, %v350_v6  ;;  %v407_v42 = vrot.slane %v399_v33, %v1478_v44 }
  0xce   : > { %v446_v43 = vrot.slane %v432_v35, %v1478_v44  ;;  %v1555_v48 = vcombine.high %v391_v26, %v423_v22  ;;  %v1564_v53 = vcombine.high %v398_v34, %v430_v28 }
  0xcf   : > { %v486_v45 = vsel %vm455_vm0, %v1543_v39, -inf  ;;  %v477_v46 = vsel %vm455_vm0, %v1545_v40, -inf  ;;  %v1553_v47 = vcombine.low %v407_v42, %v439_v36  ;;  %v414_v49 = vrot.slane %v400_v41, %v1478_v44 }
  0xd0   : > { %469 = vmax.xlane.f32.xlu1 %v468_v23  ;;  %463 = vmax.xlane.f32.xlu0 %v462_v24  ;;  %v483_v51 = vsel %vm455_vm0, %v1555_v48, -inf  ;;  %v489_v55 = vsel %vm455_vm0, %v1564_v53, -inf  ;;  %v1570_v56 = vcombine.high %v407_v42, %v439_v36 }
  0xd1   : > { %v492_v50 = vsel %vm455_vm0, %v1553_v47, -inf  ;;  %v1562_v52 = vcombine.low %v414_v49, %v446_v43  ;;  %v1574_v58 = vcombine.high %v414_v49, %v446_v43 }
  0xd2   : > { %v495_v57 = vsel %vm455_vm0, %v1570_v56, -inf }
  0xd3   : > { %v498_v54 = vsel %vm455_vm0, %v1562_v52, -inf  ;;  %v501_v59 = vsel %vm455_vm0, %v1574_v58, -inf }
  0xd4   : > { %475 = vmax.xlane.f32.xlu1 %v474_v29  ;;  %466 = vmax.xlane.f32.xlu0 %v465_v30 }
  0xd8   : > { %481 = vmax.xlane.f32.xlu1 %v480_v37  ;;  %472 = vmax.xlane.f32.xlu0 %v471_v38 }
  0xdc   : > { %487 = vmax.xlane.f32.xlu1 %v486_v45  ;;  %478 = vmax.xlane.f32.xlu0 %v477_v46 }
  0xe0   : > { %493 = vmax.xlane.f32.xlu1 %v492_v50  ;;  %484 = vmax.xlane.f32.xlu0 %v483_v51 }
  0xe4   : > { %499 = vmax.xlane.f32.xlu1 %v498_v54  ;;  %490 = vmax.xlane.f32.xlu0 %v489_v55 }
  0xe8   : > { %496 = vmax.xlane.f32.xlu0 %v495_v57 }
  0xec   : > { %502 = vmax.xlane.f32.xlu0 %v501_v59 }
 0x155   : > { %v461_v60 = vpop.xlane.xlu1 %460  ;;  %v458_v61 = vpop.xlane.xlu0 %457 }
 0x156   : > { %v505_v0 = vsub.f32 %v1492_v62, %v461_v60  ;;  %v504_v2 = vsub.f32 %v1494_v63, %v458_v61 }
 0x158   : > { %v522_v3 = vmul.f32 1.442695, %v505_v0  ;;  %v520_v7 = vmul.f32 1.442695, %v504_v2 }
 0x159   : > { %v470_v8 = vpop.xlane.xlu1 %469  ;;  %v464_v9 = vpop.xlane.xlu0 %463 }
 0x15a   : > { %1144 = vpow2.f32 %v522_v3  ;;  %v508_v10 = vsub.f32 %v1505_v13, %v470_v8  ;;  %v506_v12 = vsub.f32 %v1507_v14, %v464_v9 }
 0x15b   : > { %1146 = vpow2.f32 %v520_v7 }
 0x15c   : > { %v524_v11 = vmul.f32 1.442695, %v506_v12  ;;  %v528_v15 = vmul.f32 1.442695, %v508_v10 }
 0x15d   : > { %v476_v16 = vpop.xlane.xlu1 %475  ;;  %v467_v17 = vpop.xlane.xlu0 %466 }
 0x15e   : > { %v510_v18 = vsub.f32 %v1521_v1, %v476_v16  ;;  %v507_v62 = vsub.f32 %v1523_v4, %v467_v17  ;;  %1148 = vpow2.f32 %v524_v11 }
 0x15f   : > { %1150 = vpow2.f32 %v528_v15 }
 0x160   : > { %v526_v63 = vmul.f32 1.442695, %v507_v62  ;;  %v532_v20 = vmul.f32 1.442695, %v510_v18 }
 0x161   : > { %v482_v21 = vpop.xlane.xlu1 %481  ;;  %v473_v22 = vpop.xlane.xlu0 %472 }
 0x162   : > { %v512_v23 = vsub.f32 %v1533_v31, %v482_v21  ;;  %v509_v13 = vsub.f32 %v1535_v32, %v473_v22  ;;  %1152 = vpow2.f32 %v526_v63 }
 0x163   : > { %1154 = vpow2.f32 %v532_v20 }
 0x164   : > { %v530_v14 = vmul.f32 1.442695, %v509_v13  ;;  %v536_v24 = vmul.f32 1.442695, %v512_v23 }
 0x165   : > { %v488_v5 = vpop.xlane.xlu1 %487  ;;  %v479_v6 = vpop.xlane.xlu0 %478 }
 0x166   : > { %v514_v1 = vsub.f32 %v1543_v39, %v488_v5  ;;  %v511_v4 = vsub.f32 %v1545_v40, %v479_v6  ;;  %1156 = vpow2.f32 %v530_v14 }
 0x167   : > { %v1588_v25 = vpop.eup %1144  ;;  %1158 = vpow2.f32 %v536_v24 }
 0x168   : > { %v1590_v26 = vpop.eup %1146  ;;  %v534_v27 = vmul.f32 1.442695, %v511_v4  ;;  %v555_v28 = vsel %vm455_vm0, %v1588_v25, 0.0  ;;  %v540_v29 = vmul.f32 1.442695, %v514_v1 }
 0x169   : > { %v494_v30 = vpop.xlane.xlu1 %493  ;;  %556 = vadd.xlane.f32.xlu0 %v555_v28  ;;  %v552_v31 = vsel %vm455_vm0, %v1590_v26, 0.0  ;;  %v485_v32 = vpop.xlane.xlu0 %484 }
 0x16a   : > { %v516_v33 = vsub.f32 %v1553_v47, %v494_v30  ;;  %553 = vadd.xlane.f32.xlu1 %v552_v31  ;;  %v513_v34 = vsub.f32 %v1555_v48, %v485_v32  ;;  %1160 = vpow2.f32 %v534_v27 }
 0x16b   : > { %v1598_v35 = vpop.eup %1148  ;;  %1162 = vpow2.f32 %v540_v29 }
 0x16c   : > { %v538_v36 = vmul.f32 1.442695, %v513_v34  ;;  %v544_v37 = vmul.f32 1.442695, %v516_v33  ;;  %v558_v39 = vsel %vm455_vm0, %v1598_v35, 0.0  ;;  %v1602_v41 = vpop.eup %1150 }
 0x16d   : > { %v500_v38 = vpop.xlane.xlu1 %499  ;;  %v491_v40 = vpop.xlane.xlu0 %490  ;;  %v564_v48 = vsel %vm455_vm0, %v1602_v41, 0.0 }
 0x16e   : > { %v518_v42 = vsub.f32 %v1562_v52, %v500_v38  ;;  %559 = vadd.xlane.f32.xlu1 %v558_v39  ;;  %v515_v43 = vsub.f32 %v1564_v53, %v491_v40  ;;  %1164 = vpow2.f32 %v538_v36 }
 0x16f   : > { %v1606_v45 = vpop.eup %1152  ;;  %1166 = vpow2.f32 %v544_v37 }
 0x170   : > { %v542_v46 = vmul.f32 1.442695, %v515_v43  ;;  %v548_v47 = vmul.f32 1.442695, %v518_v42  ;;  %v561_v49 = vsel %vm455_vm0, %v1606_v45, 0.0  ;;  %v1612_v51 = vpop.eup %1154 }
 0x171   : > { %v497_v50 = vpop.xlane.xlu0 %496  ;;  %562 = vadd.xlane.f32.xlu0 %v561_v49  ;;  %v570_v55 = vsel %vm455_vm0, %v1612_v51, 0.0 }
 0x172   : > { %565 = vadd.xlane.f32.xlu1 %v564_v48  ;;  %v517_v52 = vsub.f32 %v1570_v56, %v497_v50  ;;  %1168 = vpow2.f32 %v542_v46 }
 0x173   : > { %v1615_v53 = vpop.eup %1156  ;;  %1170 = vpow2.f32 %v548_v47 }
 0x174   : > { %v546_v54 = vmul.f32 1.442695, %v517_v52  ;;  %v567_v57 = vsel %vm455_vm0, %v1615_v53, 0.0  ;;  %v1621_v60 = vpop.eup %1158 }
 0x175   : > { %v503_v59 = vpop.xlane.xlu0 %502  ;;  %568 = vadd.xlane.f32.xlu0 %v567_v57  ;;  %v576_v2 = vsel %vm455_vm0, %v1621_v60, 0.0 }
 0x176   : > { %1172 = vpow2.f32 %v546_v54  ;;  %571 = vadd.xlane.f32.xlu1 %v570_v55  ;;  %v519_v61 = vsub.f32 %v1574_v58, %v503_v59 }
 0x177   : > { %v1624_v56 = vpop.eup %1160 }
 0x178   : > { %v550_v0 = vmul.f32 1.442695, %v519_v61  ;;  %v573_v3 = vsel %vm455_vm0, %v1624_v56, 0.0  ;;  %v1630_v7 = vpop.eup %1162 }
 0x179   : > { %574 = vadd.xlane.f32.xlu0 %v573_v3  ;;  %v582_v9 = vsel %vm455_vm0, %v1630_v7, 0.0 }
 0x17a   : > { %1174 = vpow2.f32 %v550_v0  ;;  %577 = vadd.xlane.f32.xlu1 %v576_v2 }
 0x17b   : > { %v1632_v8 = vpop.eup %1164 }
 0x17c   : > { %v579_v58 = vsel %vm455_vm0, %v1632_v8, 0.0  ;;  %v1638_v10 = vpop.eup %1166 }
 0x17d   : > { %580 = vadd.xlane.f32.xlu0 %v579_v58  ;;  %v588_v11 = vsel %vm455_vm0, %v1638_v10, 0.0 }
 0x17e   : > { %583 = vadd.xlane.f32.xlu1 %v582_v9 }
 0x17f   : > { %v1640_v12 = vpop.eup %1168 }
 0x180   : > { %v585_v15 = vsel %vm455_vm0, %v1640_v12, 0.0  ;;  %v1646_v16 = vpop.eup %1170 }
 0x181   : > { %586 = vadd.xlane.f32.xlu0 %v585_v15  ;;  %v594_v62 = vsel %vm455_vm0, %v1646_v16, 0.0 }
 0x182   : > { %589 = vadd.xlane.f32.xlu1 %v588_v11 }
 0x183   : > { %v1648_v17 = vpop.eup %1172 }
 0x184   : > { %v591_v18 = vsel %vm455_vm0, %v1648_v17, 0.0 }
 0x185   : > { %592 = vadd.xlane.f32.xlu0 %v591_v18 }
 0x186   : > { %595 = vadd.xlane.f32.xlu1 %v594_v62 }
 0x187   : > { %v1654_v63 = vpop.eup %1174 }
 0x188   : > { %v597_v20 = vsel %vm455_vm0, %v1654_v63, 0.0 }
 0x189   : > { %598 = vadd.xlane.f32.xlu0 %v597_v20 }
 0x1f2   : > { %v557_v22 = vpop.xlane.xlu0 %556 }
 0x1f3   : > { %v554_v21 = vpop.xlane.xlu1 %553  ;;  %1176 = vrcp.f32 %v557_v22 }
 0x1f7   : > { %v560_v23 = vpop.xlane.xlu1 %559 }
 0x1f8   : > { %1178 = vrcp.f32 %v560_v23 }
 0x1fa   : > { %v563_v14 = vpop.xlane.xlu0 %562 }
 0x1fb   : > { %v566_v13 = vpop.xlane.xlu1 %565  ;;  %1180 = vrcp.f32 %v563_v14 }
 0x1fc   : > { %1182 = vrcp.f32 %v554_v21 }
 0x1fe   : > { %v569_v5 = vpop.xlane.xlu0 %568 }
 0x1ff   : > { %v572_v24 = vpop.xlane.xlu1 %571 }
 0x200   : > { %1184 = vrcp.f32 %v572_v24  ;;  %v1177_v28 = vpop.eup %1176 }
 0x201   : > { %1186 = vrcp.f32 %v566_v13  ;;  %v1662_v37 = vmul.f32 %v1177_v28, %v1588_v25 }
 0x202   : > { %1188 = vrcp.f32 %v569_v5  ;;  %v575_v1 = vpop.xlane.xlu0 %574 }
 0x203   : > { %v578_v6 = vpop.xlane.xlu1 %577  ;;  %1190 = vrcp.f32 %v575_v1 }
 0x205   : > { %v1179_v29 = vpop.eup %1178 }
 0x206   : > { %v581_v27 = vpop.xlane.xlu0 %580  ;;  %v1665_v38 = vmul.f32 %v1179_v29, %v1598_v35 }
 0x207   : > { %v584_v4 = vpop.xlane.xlu1 %583 }
 0x208   : > { %v1181_v30 = vpop.eup %1180  ;;  %1192 = vrcp.f32 %v584_v4 }
 0x209   : > { %v1659_v33 = vmul.f32 %v1181_v30, %v1606_v45  ;;  %v1183_v34 = vpop.eup %1182  ;;  %1194 = vrcp.f32 %v581_v27 }
 0x20a   : > { %v587_v32 = vpop.xlane.xlu0 %586  ;;  %v1668_v43 = vmul.f32 %v1183_v34, %v1590_v26 }
 0x20b   : > { %v590_v31 = vpop.xlane.xlu1 %589  ;;  %1196 = vrcp.f32 %v587_v32  ;;  %v648_v46 = vcombine.low %v1662_v37, %v1659_v33 }
 0x20c   : > { %1198 = vrcp.f32 %v578_v6  ;;  %v632_v35 = vcombine.low %v1668_v43, %v1665_v38 }
 0x20d   : > { %v1185_v36 = vpop.eup %1184  ;;  %1200 = vrcp.f32 %v590_v31 }
 0x20e   : > { %v1187_v39 = vpop.eup %1186  ;;  %v593_v42 = vpop.xlane.xlu0 %592  ;;  %v1671_v45 = vmul.f32 %v1185_v36, %v1612_v51  ;;  %v656_v51 = vrot.slane %v648_v46, %v1466_v19  ;;  %v640_v54 = vrot.slane %v632_v35, %v1466_v19  ;;  %v649_v36 = vcombine.high %v1662_v37, %v1659_v33 }
 0x20f   : > { %v596_v40 = vpop.xlane.xlu1 %595  ;;  %v1189_v47 = vpop.eup %1188  ;;  %v1676_v25 = vmul.f32 %v1187_v39, %v1602_v41  ;;  %v633_v46 = vcombine.high %v1668_v43, %v1665_v38 }
 0x210   : > { %1202 = vrcp.f32 %v596_v40  ;;  %v1191_v48 = vpop.eup %1190  ;;  %v621_v26 = vmul.f32 %v1189_v47, %v1615_v53  ;;  %v696_v59 = vcombine.low %v640_v54, %v656_v51  ;;  %v697_v11 = vcombine.high %v640_v54, %v656_v51 }
 0x211   : > { %1204 = vrcp.f32 %v593_v42  ;;  %v623_v50 = vmul.f32 %v1191_v48, %v1624_v56  ;;  %v664_v52 = vcombine.low %v1676_v25, %v1671_v45 }
 0x212   : > { %v599_v49 = vpop.xlane.xlu0 %598  ;;  %v1689_v9 = vrot.slane %v696_v59, %v1478_v44 }
 0x213   : > { %1206 = vrcp.f32 %v599_v49  ;;  %v680_v41 = vcombine.low %v621_v26, %v623_v50  ;;  %v672_v55 = vrot.slane %v664_v52, %v1466_v19  ;;  %v681_v29 = vcombine.high %v621_v26, %v623_v50 }
 0x214   : > { %v647_v52 = vrot.slane %v633_v46, %v1466_v19 }
 0x215   : > { %v688_v57 = vrot.slane %v680_v41, %v1466_v19  ;;  %v1193_v61 = vpop.eup %1192  ;;  %v695_v47 = vrot.slane %v681_v29, %v1466_v19 }
 0x216   : > { %v1195_v0 = vpop.eup %1194  ;;  %v626_v20 = vmul.f32 %v1193_v61, %v1630_v7 }
 0x217   : > { %v728_v2 = vcombine.low %v672_v55, %v688_v57  ;;  %v729_v53 = vcombine.high %v672_v55, %v688_v57  ;;  %v625_v62 = vmul.f32 %v1195_v0, %v1632_v8 }
 0x218   : > { %v1197_v3 = vpop.eup %1196 }
 0x219   : > { %v1199_v56 = vpop.eup %1198  ;;  %v1692_v58 = vrot.slane %v728_v2, %v1478_v44  ;;  %v627_v15 = vmul.f32 %v1197_v3, %v1640_v12  ;;  %v743_v23 = vrot.slane %v729_v53, %v1478_v44  ;;  %v711_v12 = vrot.slane %v697_v11, %v1478_v44 }
 0x21a   : > { %v1201_v18 = vpop.eup %1200  ;;  %v624_v13 = vmul.f32 %v1199_v56, %v1621_v60 }
 0x21b   : > { %v761_v22 = vcombine.high %v1689_v9, %v1692_v58  ;;  %v784_v24 = vcombine.low %v625_v62, %v627_v15  ;;  %v628_v8 = vmul.f32 %v1201_v18, %v1638_v10  ;;  %v760_v7 = vcombine.low %v1689_v9, %v1692_v58 }
 0x21c   : > { %v768_v6 = vcombine.low %v624_v13, %v626_v20  ;;  %v762_v4 = vcombine.low %v711_v12, %v743_v23  ;;  %v785_v32 = vcombine.high %v625_v62, %v627_v15  ;;  %v769_v49 = vcombine.high %v624_v13, %v626_v20 }
 0x21d   : > { %v1203_v21 = vpop.eup %1202  ;;  %906 = vrot.lane.b32.xlu1 %v761_v22, %s1311_s3  ;;  %v763_v3 = vcombine.high %v711_v12, %v743_v23 }
 0x21e   : > { %v630_v14 = vmul.f32 %v1203_v21, %v1646_v16  ;;  %v1205_v5 = vpop.eup %1204  ;;  %v792_v16 = vrot.slane %v784_v24, %v1466_v19  ;;  %v776_v30 = vrot.slane %v768_v6, %v1466_v19  ;;  %v799_v33 = vrot.slane %v785_v32, %v1466_v19 }
 0x21f   : > { %v629_v27 = vmul.f32 %v1205_v5, %v1648_v17  ;;  %v665_v17 = vcombine.high %v1676_v25, %v1671_v45  ;;  %v663_v45 = vrot.slane %v649_v36, %v1466_v19  ;;  %v783_v57 = vrot.slane %v769_v49, %v1466_v19 }
 0x220   : > { %v1207_v1 = vpop.eup %1206  ;;  %v800_v28 = vcombine.low %v628_v8, %v630_v14  ;;  %v801_v34 = vcombine.high %v628_v8, %v630_v14  ;;  %v833_v40 = vcombine.high %v776_v30, %v792_v16  ;;  %v832_v42 = vcombine.low %v776_v30, %v792_v16 }
 0x221   : > { %v631_v60 = vmul.f32 %v1207_v1, %v1654_v63  ;;  %914 = vrot.lane.b32.xlu1 %v762_v4, %s1310_s2  ;;  %v679_v25 = vrot.slane %v665_v17, %v1466_v19  ;;  %v848_v0 = vcombine.low %v783_v57, %v799_v33  ;;  %v712_v2 = vcombine.low %v647_v52, %v663_v45 }
 0x222   : > { %v808_v63 = vrot.slane %v800_v28, %v1466_v19  ;;  %v815_v37 = vrot.slane %v801_v34, %v1466_v19  ;;  %v847_v50 = vrot.slane %v833_v40, %v1478_v44  ;;  %v840_v38 = vrot.slane %v832_v42, %v1478_v44 }
 0x223   : > { %v816_v31 = vcombine.low %v629_v27, %v631_v60  ;;  %v817_v10 = vcombine.high %v629_v27, %v631_v60  ;;  %v744_v54 = vcombine.low %v679_v25, %v695_v47  ;;  %v720_v15 = vrot.slane %v712_v2, %v1478_v44 }
 0x224   : > { %v745_v21 = vcombine.high %v679_v25, %v695_v47  ;;  %v849_v22 = vcombine.high %v783_v57, %v799_v33  ;;  %v713_v23 = vcombine.high %v647_v52, %v663_v45 }
 0x225   : > { %v824_v39 = vrot.slane %v816_v31, %v1466_v19  ;;  %v831_v26 = vrot.slane %v817_v10, %v1466_v19  ;;  %v752_v11 = vrot.slane %v744_v54, %v1478_v44  ;;  %v856_v19 = vrot.slane %v848_v0, %v1478_v44 }
 0x226   : > { %v759_v5 = vrot.slane %v745_v21, %v1478_v44  ;;  %v863_v12 = vrot.slane %v849_v22, %v1478_v44  ;;  %v727_v8 = vrot.slane %v713_v23, %v1478_v44 }
 0x227   : > { %v865_v35 = vcombine.high %v808_v63, %v824_v39  ;;  %v864_v48 = vcombine.low %v808_v63, %v824_v39  ;;  %v880_v59 = vcombine.low %v815_v37, %v831_v26  ;;  %v764_v62 = vcombine.low %v720_v15, %v752_v11 }
 0x228   : > { %v881_v20 = vcombine.high %v815_v37, %v831_v26  ;;  %v765_v14 = vcombine.high %v720_v15, %v752_v11  ;;  %v766_v1 = vcombine.low %v727_v8, %v759_v5  ;;  %v767_v27 = vcombine.high %v727_v8, %v759_v5 }
 0x229   : > { %v879_v51 = vrot.slane %v865_v35, %v1478_v44  ;;  %v872_v43 = vrot.slane %v864_v48, %v1478_v44  ;;  %v888_v56 = vrot.slane %v880_v59, %v1478_v44 }
 0x22a   : > { %v895_v24 = vrot.slane %v881_v20, %v1478_v44 }
 0x22b   : > { %v898_v41 = vcombine.low %v847_v50, %v879_v51  ;;  %v897_v55 = vcombine.high %v840_v38, %v872_v43  ;;  %v896_v61 = vcombine.low %v840_v38, %v872_v43  ;;  %v899_v53 = vcombine.high %v847_v50, %v879_v51 }
 0x22c   : > { %v900_v18 = vcombine.low %v856_v19, %v888_v56  ;;  %v901_v13 = vcombine.high %v856_v19, %v888_v56  ;;  %v902_v6 = vcombine.low %v863_v12, %v895_v24  ;;  %v903_v4 = vcombine.high %v863_v12, %v895_v24 }
 0x22d   : > { %916 = vrot.lane.b32.xlu1 %v898_v41, %s1310_s2  ;;  %908 = vrot.lane.b32.xlu0 %v897_v55, %s1311_s3 }
 0x231   : > { %924 = vrot.lane.b32.xlu1 %v899_v53, %s1309_s29  ;;  %922 = vrot.lane.b32.xlu0 %v763_v3, %s1309_s29 }
 0x235   : > { %932 = vrot.lane.b32.xlu1 %v900_v18, %s1308_s17  ;;  %930 = vrot.lane.b32.xlu0 %v764_v62, %s1308_s17 }
 0x239   : > { %940 = vrot.lane.b32.xlu1 %v901_v13, %s1307_s28  ;;  %938 = vrot.lane.b32.xlu0 %v765_v14, %s1307_s28 }
 0x23d   : > { %948 = vrot.lane.b32.xlu1 %v902_v6, %s1305_s25  ;;  %946 = vrot.lane.b32.xlu0 %v766_v1, %s1305_s25 }
 0x241   : > { %956 = vrot.lane.b32.xlu1 %v903_v4, %s1306_s27  ;;  %954 = vrot.lane.b32.xlu0 %v767_v27, %s1306_s27 }
 0x28f   : > { %v907_v60 = vpop.permute.xlu1 %906 }
 0x290   : > { %v960_v17 = vsel %vm455_vm0, %v760_v7, %v907_v60 }
 0x293   : > { %v915_v16 = vpop.permute.xlu1 %914 }
 0x294   : > { %v963_v63 = vsel %vm962_vm1, %v960_v17, %v915_v16 }
 0x29f   : > { %v917_v28 = vpop.permute.xlu1 %916  ;;  %v909_v29 = vpop.permute.xlu0 %908 }
 0x2a0   : > { %v961_v36 = vsel %vm455_vm0, %v896_v61, %v909_v29 }
 0x2a1   : > { %v964_v39 = vsel %vm962_vm1, %v961_v36, %v917_v28 }
 0x2a3   : > { %v925_v30 = vpop.permute.xlu1 %924  ;;  %v923_v31 = vpop.permute.xlu0 %922 }
 0x2a4   : > { %v967_v46 = vsel %vm965_vm2, %v964_v39, %v925_v30  ;;  %v966_v47 = vsel %vm965_vm2, %v963_v63, %v923_v31 }
 0x2a7   : > { %v933_v44 = vpop.permute.xlu1 %932  ;;  %v931_v10 = vpop.permute.xlu0 %930 }
 0x2a8   : > { %v970_v35 = vsel %vm968_vm3, %v967_v46, %v933_v44  ;;  %v969_v48 = vsel %vm968_vm3, %v966_v47, %v931_v10 }
 0x2ab   : > { %v941_v32 = vpop.permute.xlu1 %940  ;;  %v939_v34 = vpop.permute.xlu0 %938 }
 0x2ac   : > { %v973_v9 = vsel %vm971_vm4, %v970_v35, %v941_v32  ;;  %v972_v58 = vsel %vm971_vm4, %v969_v48, %v939_v34 }
 0x2af   : > { %v949_v40 = vpop.permute.xlu1 %948  ;;  %v947_v42 = vpop.permute.xlu0 %946 }
 0x2b0   : > { %v976_v7 = vsel %vm974_vm5, %v973_v9, %v949_v40  ;;  %v975_v49 = vsel %vm974_vm5, %v972_v58, %v947_v42 }
 0x2b3   : > { %v957_v26 = vpop.permute.xlu1 %956  ;;  %v955_v33 = vpop.permute.xlu0 %954 }
 0x2b4   : > { %v979_v37 = vsel %vm977_vm6, %v976_v7, %v957_v26  ;;  %v978_v45 = vsel %vm977_vm6, %v975_v49, %v955_v33 }
 0x2b5   : > { %981 = vst [vmem:[%s134_s4 + $0x8] sm:$0xff] %v979_v37  ;;  %980 = vst [vmem:[%s134_s4] sm:$0xff] %v978_v45 }
 0x2b6   : > { %1249 = shalt.err (!%p1246_p9)
}
 0x2b7   : > { %s1250_s26 = scalar_lea.hbm %s1765_s16, 256  ;;  %s1254_s27 = scalar_lea.hbm %s1808_s1, 1024 }
 0x2b8   : > { %p1251_p13 = scmp.ne.s32.totalorder %s1765_s16, %s1250_s26  ;;  %p1255_p2 = scmp.lt.s32.totalorder %s1765_s16, %s1808_s1 }
 0x2b9   : > { %p1256_p3 = scmp.lt.s32.totalorder %s1254_s27, %s1250_s26 }
 0x2ba   : > { %p1252_p1 = pnand %p1251_p13, %p1817_p11 }
 0x2bb   : > { %p1257_p6 = por %p1256_p3, %p1255_p2 }
 0x2bc   : > { %p1253_p0 = pneg %p1252_p1 }
 0x2be   : > { %p1258_p10 = pnand %p1257_p6, %p1253_p0 }
 0x2c0   : > { %1261 = shalt.err (!%p1258_p10)
}
 0x2c1   : > { %s1315_s29 = smov 128   ;;  %s1316_s2 = smov 8  }
 0x2c2   : > { %1087 = dma.vmem_to_hbm [thread:$0]  (%p1817_p11), %s1760_s5, 256, %s1765_s16, %s983_s10, %s1315_s29, %s1315_s29, %s1316_s2  }
 0x2c3 PF: > { %p1098_p12 = scmp.ge.s32.totalorder %s1300_s9, 2  ;;  %s1011_s3 = sand.u32 1, %s1288_s6  }
 0x2c4   : > { %p1818_p4 = scmp.ne.s32.totalorder %s1814_s19, 0  ;;  %s1012_s4 = scalar_lea.sflag [#allocation4], %s1011_s3 }
 0x2c6   : > { %p1094_p5 = pnand %p1098_p12, %p1818_p4 }
 0x2c8   : > { %p1095_p7 = pneg %p1094_p5 }
 0x2ca   : > { %1283 = dma.done.wait (%p1095_p7), %s1012_s4, 256  }
 0x2cb   : > { %1285 = vsyncadd (%p1095_p7), %s1012_s4, 4294967040  ;;  %p14_p8 = scmp.ge.s32.totalorder %s1352_s12, 6   ;;  %s1819_s6 = smov %s1292_s7 }
 0x2cc   : > { %s1820_s7 = smov %s1296_s8  ;;  %s1821_s8 = smov %s1364_s15 }
 0x2cd   : > { %s1822_s9 = smov %s1352_s12  ;;  %16 = sbr.rel (!%p14_p8) target bundleno = 5 (0x5), region = 69 }
 0x2d2   :  { %1017 = vsyncpa [#allocation3], 1 }
 0x2d3   :  { %1019 = vsyncpa [#allocation3 + $0x1], 1 }
 0x2d4   :  { %1020 = vsyncpa [#allocation4], 1 }
 0x2d5   :  { %1022 = vsyncpa [#allocation4 + $0x1], 1 }

</bundles_post_ra>
